<compile_context>
chip_gen: v7x
topology: tpu7x:2x2x1
jax: 0.10.0
libtpu: 0.0.40
codegen_flags: <defaults>
</compile_context>

<pallas_src>
import functools

import jax
import jax.numpy as jnp
from jax.experimental import pallas as pl
from jax.experimental.pallas import tpu as pltpu

_CLAMP = 1000000.0
_EPS = 1e-6


def _cmd_kernel(x1_ref, x2_ref, o_ref, acc_ref, *,
                n_moments: int, inv_n: float, d_valid: int, td: int,
                mask_cols: bool):
    j = pl.program_id(0)

    @pl.when(j == 0)
    def _init():
        acc_ref[...] = jnp.zeros_like(acc_ref)

    # Load tile, upcast (inputs may be bf16), clamp like torch.clamp.
    x1 = jnp.clip(x1_ref[...].astype(jnp.float32), -_CLAMP, _CLAMP)
    x2 = jnp.clip(x2_ref[...].astype(jnp.float32), -_CLAMP, _CLAMP)

    # Mask for padded / out-of-range feature columns (static fast-path when
    # every tile is fully valid).
    if mask_cols:
        col = jax.lax.broadcasted_iota(jnp.int32, (1, td), 1) + j * td
        valid = col < d_valid
    else:
        valid = None

    def col_power(a, b):
        # Per-column matchnorm contribution: min((|a-b|+eps)^2, 1e6), (1, td).
        # NOTE: only the per-element clamp here; the clamp on the *global*
        # sum is applied in the finalize step.
        p = jnp.minimum((jnp.abs(a - b) + _EPS) ** 2, _CLAMP)
        if valid is not None:
            p = jnp.where(valid, p, 0.0)
        return p

    # ---- moment 1: column means over the batch axis (sum * 1/N).
    mx1 = jnp.sum(x1, axis=0, keepdims=True) * inv_n
    mx2 = jnp.sum(x2, axis=0, keepdims=True) * inv_n
    acc_ref[pl.ds(0, 1), :] = acc_ref[pl.ds(0, 1), :] + col_power(mx1, mx2)

    sx1 = x1 - mx1
    sx2 = x2 - mx2

    # ---- higher central moments k = 2..n_moments:
    # hoist abs+eps, build powers incrementally, interleave the two streams.
    a1 = jnp.abs(sx1) + _EPS
    a2 = jnp.abs(sx2) + _EPS
    p1 = a1
    p2 = a2
    for k in range(2, n_moments + 1):
        p1 = p1 * a1
        p2 = p2 * a2
        ss1 = jnp.sum(p1, axis=0, keepdims=True) * inv_n
        ss2 = jnp.sum(p2, axis=0, keepdims=True) * inv_n
        m = k - 1
        acc_ref[pl.ds(m, 1), :] = acc_ref[pl.ds(m, 1), :] + col_power(ss1, ss2)

    # ---- finalize on the last grid step: global clamp + sqrt per moment,
    # sum over moments, divide by N.
    @pl.when(j == pl.num_programs(0) - 1)
    def _finalize():
        scms = jnp.float32(0.0)
        for m in range(n_moments):
            total = jnp.minimum(jnp.sum(acc_ref[pl.ds(m, 1), :]), _CLAMP)
            scms = scms + jnp.sqrt(total + _EPS)
        o_ref[0, 0] = scms * inv_n


def _round_up(x: int, m: int) -> int:
    return ((x + m - 1) // m) * m


def cmd_pallas(x1, x2, n_moments: int = 5, max_d_tile: int = 512):
    """CMD loss. x1, x2: (N, D). Returns a scalar (f32)."""
    assert x1.shape == x2.shape and x1.ndim == 2
    n, d = x1.shape

    # Lane-align the feature axis: tile width is a multiple of 128 so loads /
    # VPU ops use full vregs.  Pad D up to a multiple of 128 only when needed
    # (padded columns are masked inside the kernel).  Tile width is capped at
    # max_d_tile to bound VMEM (conservative for v7x's 64 MiB).
    d_pad = _round_up(d, 128)
    td = min(d_pad, _round_up(max_d_tile, 128))
    if d_pad != d:
        x1 = jnp.pad(x1, ((0, 0), (0, d_pad - d)))
        x2 = jnp.pad(x2, ((0, 0), (0, d_pad - d)))
    num_tiles = pl.cdiv(d_pad, td)
    mask_cols = (num_tiles * td) != d

    kernel = functools.partial(
        _cmd_kernel,
        n_moments=n_moments,
        inv_n=1.0 / float(n),
        d_valid=d,
        td=td,
        mask_cols=mask_cols,
    )

    out = pl.pallas_call(
        kernel,
        out_shape=jax.ShapeDtypeStruct((1, 1), jnp.float32),
        grid_spec=pltpu.PrefetchScalarGridSpec(
            num_scalar_prefetch=0,
            grid=(num_tiles,),
            in_specs=[
                pl.BlockSpec((n, td), lambda j: (0, j)),
                pl.BlockSpec((n, td), lambda j: (0, j)),
            ],
            out_specs=pl.BlockSpec(memory_space=pltpu.MemorySpace.SMEM),
            scratch_shapes=[pltpu.VMEM((n_moments, td), jnp.float32)],
        ),
        compiler_params=pltpu.CompilerParams(
            dimension_semantics=("arbitrary",),  # all steps accumulate into scratch
        ),
    )(x1, x2)
    return out[0, 0]


def cmd_reference(x1, x2, n_moments: int = 5):
    """Pure-JAX reference mirroring the PyTorch forward exactly."""
    x1 = jnp.clip(x1.astype(jnp.float32), -_CLAMP, _CLAMP)
    x2 = jnp.clip(x2.astype(jnp.float32), -_CLAMP, _CLAMP)

    def matchnorm(a, b):
        power = jnp.minimum((jnp.abs(a - b) + _EPS) ** 2, _CLAMP)
        summed = jnp.minimum(jnp.sum(power), _CLAMP)
        return jnp.sqrt(summed + _EPS)

    mx1 = jnp.mean(x1, axis=0)
    mx2 = jnp.mean(x2, axis=0)
    sx1 = x1 - mx1
    sx2 = x2 - mx2
    scms = matchnorm(mx1, mx2)
    for k in range(2, n_moments + 1):
        ss1 = jnp.mean((jnp.abs(sx1) + _EPS) ** k, axis=0)
        ss2 = jnp.mean((jnp.abs(sx2) + _EPS) ** k, axis=0)
        scms = scms + matchnorm(ss1, ss2)
    return scms / x1.shape[0]


if __name__ == "__main__":
    key = jax.random.PRNGKey(0)
    k1, k2 = jax.random.split(key)
    N, D = 8, 32  # (batch, hidden)
    x1 = jax.random.normal(k1, (N, D), dtype=jnp.float32)
    x2 = jax.random.normal(k2, (N, D), dtype=jnp.float32) * 1.5 + 0.25

    cmd_jit = jax.jit(lambda a, b: cmd_pallas(a, b, n_moments=5))
    out = cmd_jit(x1, x2)
    out = jax.block_until_ready(out)

    ref = cmd_reference(x1, x2, 5)
    assert jnp.allclose(out, ref, rtol=1e-5, atol=1e-5), (out, ref)

    print("KERNEL_OK")
</pallas_src>

<mosaic_0001>
module attributes {stable_mosaic.version = 11 : i64} {
  func.func @_cmd_kernel(%arg0: i32, %arg1: memref<8x128xf32, #tpu.memory_space<vmem>>, %arg2: memref<8x128xf32, #tpu.memory_space<vmem>>, %arg3: memref<1x1xf32, #tpu.memory_space<smem>>, %arg4: memref<5x128xf32, #tpu.memory_space<vmem>>) attributes {dimension_semantics = [#tpu.dimension_semantics<arbitrary>], iteration_bounds = array<i64: 1>, scalar_prefetch = 0 : i64, scratch_operands = 1 : i64, tpu.core_type = #tpu.core_type<tc>, window_params = [{transform_indices = @transform_0, window_bounds = array<i64: 8, 128>}, {transform_indices = @transform_1, window_bounds = array<i64: 8, 128>}, {transform_indices = @transform_2, window_bounds = array<i64: 1, 1>}]} {
    %c0_i32 = arith.constant 0 : i32
    %0 = arith.cmpi eq, %arg0, %c0_i32 : i32
    %1 = arith.extui %0 : i1 to i32
    %c0_i32_0 = arith.constant 0 : i32
    %2 = arith.cmpi ne, %1, %c0_i32_0 : i32
    scf.if %2 {
      %cst_62 = arith.constant 0.000000e+00 : f32
      %140 = vector.broadcast %cst_62 : f32 to vector<5x128xf32>
      %c0_63 = arith.constant 0 : index
      %c0_64 = arith.constant 0 : index
      %141 = vector.load %arg4[%c0_63, %c0_64] : memref<5x128xf32, #tpu.memory_space<vmem>>, vector<5x128xf32>
      tpu.vector_store %arg4[%c0_63, %c0_64], %140 {strides = array<i32>} : memref<5x128xf32, #tpu.memory_space<vmem>>, vector<5x128xf32>,
    } else {
    }
    %c0 = arith.constant 0 : index
    %c0_1 = arith.constant 0 : index
    %3 = vector.load %arg1[%c0, %c0_1] : memref<8x128xf32, #tpu.memory_space<vmem>>, vector<8x128xf32>
    %cst = arith.constant -1.000000e+06 : f32
    %cst_2 = arith.constant 1.000000e+06 : f32
    %4 = vector.broadcast %cst : f32 to vector<8x128xf32>
    %5 = arith.maximumf %4, %3 : vector<8x128xf32>
    %6 = vector.broadcast %cst_2 : f32 to vector<8x128xf32>
    %7 = arith.minimumf %6, %5 : vector<8x128xf32>
    %c0_3 = arith.constant 0 : index
    %c0_4 = arith.constant 0 : index
    %8 = vector.load %arg2[%c0_3, %c0_4] : memref<8x128xf32, #tpu.memory_space<vmem>>, vector<8x128xf32>
    %cst_5 = arith.constant -1.000000e+06 : f32
    %cst_6 = arith.constant 1.000000e+06 : f32
    %9 = vector.broadcast %cst_5 : f32 to vector<8x128xf32>
    %10 = arith.maximumf %9, %8 : vector<8x128xf32>
    %11 = vector.broadcast %cst_6 : f32 to vector<8x128xf32>
    %12 = arith.minimumf %11, %10 : vector<8x128xf32>
    %13 = tpu.iota {dimensions = array<i32: 1>} : vector<1x128xi32>
    %c128_i32 = arith.constant 128 : i32
    %14 = arith.muli %arg0, %c128_i32 : i32
    %15 = vector.broadcast %14 : i32 to vector<1x128xi32>
    %16 = arith.addi %13, %15 : vector<1x128xi32>
    %c32_i32 = arith.constant 32 : i32
    %17 = vector.broadcast %c32_i32 : i32 to vector<1x128xi32>
    %18 = arith.cmpi slt, %16, %17 : vector<1x128xi32>
    %cst_7 = arith.constant dense<0.000000e+00> : vector<128xf32>
    %19 = vector.multi_reduction <add>, %7, %cst_7 [0] : vector<8x128xf32> to vector<128xf32>
    %20 = vector.shape_cast %19 : vector<128xf32> to vector<1x128xf32>
    %cst_8 = arith.constant 1.250000e-01 : f32
    %21 = vector.broadcast %cst_8 : f32 to vector<1x128xf32>
    %22 = arith.mulf %20, %21 : vector<1x128xf32>
    %cst_9 = arith.constant dense<0.000000e+00> : vector<128xf32>
    %23 = vector.multi_reduction <add>, %12, %cst_9 [0] : vector<8x128xf32> to vector<128xf32>
    %24 = vector.shape_cast %23 : vector<128xf32> to vector<1x128xf32>
    %cst_10 = arith.constant 1.250000e-01 : f32
    %25 = vector.broadcast %cst_10 : f32 to vector<1x128xf32>
    %26 = arith.mulf %24, %25 : vector<1x128xf32>
    %c0_11 = arith.constant 0 : index
    %c0_12 = arith.constant 0 : index
    %27 = vector.load %arg4[%c0_11, %c0_12] : memref<5x128xf32, #tpu.memory_space<vmem>>, vector<1x128xf32>
    %28 = arith.subf %22, %26 : vector<1x128xf32>
    %29 = math.absf %28 : vector<1x128xf32>
    %cst_13 = arith.constant 9.99999997E-7 : f32
    %30 = vector.broadcast %cst_13 : f32 to vector<1x128xf32>
    %31 = arith.addf %29, %30 : vector<1x128xf32>
    %32 = arith.mulf %31, %31 : vector<1x128xf32>
    %cst_14 = arith.constant 1.000000e+06 : f32
    %33 = vector.broadcast %cst_14 : f32 to vector<1x128xf32>
    %34 = arith.minimumf %32, %33 : vector<1x128xf32>
    %cst_15 = arith.constant 0.000000e+00 : f32
    %35 = vector.broadcast %cst_15 : f32 to vector<1x128xf32>
    %36 = arith.select %18, %34, %35 : vector<1x128xi1>, vector<1x128xf32>
    %37 = arith.addf %27, %36 : vector<1x128xf32>
    %c0_16 = arith.constant 0 : index
    %c0_17 = arith.constant 0 : index
    %38 = vector.load %arg4[%c0_16, %c0_17] : memref<5x128xf32, #tpu.memory_space<vmem>>, vector<1x128xf32>
    tpu.vector_store %arg4[%c0_16, %c0_17], %37 {strides = array<i32>} : memref<5x128xf32, #tpu.memory_space<vmem>>, vector<1x128xf32>,
    %39 = vector.broadcast %22 : vector<1x128xf32> to vector<8x128xf32>
    %40 = arith.subf %7, %39 : vector<8x128xf32>
    %41 = vector.broadcast %26 : vector<1x128xf32> to vector<8x128xf32>
    %42 = arith.subf %12, %41 : vector<8x128xf32>
    %43 = math.absf %40 : vector<8x128xf32>
    %cst_18 = arith.constant 9.99999997E-7 : f32
    %44 = vector.broadcast %cst_18 : f32 to vector<8x128xf32>
    %45 = arith.addf %43, %44 : vector<8x128xf32>
    %46 = math.absf %42 : vector<8x128xf32>
    %cst_19 = arith.constant 9.99999997E-7 : f32
    %47 = vector.broadcast %cst_19 : f32 to vector<8x128xf32>
    %48 = arith.addf %46, %47 : vector<8x128xf32>
    %49 = arith.mulf %45, %45 : vector<8x128xf32>
    %50 = arith.mulf %48, %48 : vector<8x128xf32>
    %cst_20 = arith.constant dense<0.000000e+00> : vector<128xf32>
    %51 = vector.multi_reduction <add>, %49, %cst_20 [0] : vector<8x128xf32> to vector<128xf32>
    %52 = vector.shape_cast %51 : vector<128xf32> to vector<1x128xf32>
    %cst_21 = arith.constant 1.250000e-01 : f32
    %53 = vector.broadcast %cst_21 : f32 to vector<1x128xf32>
    %54 = arith.mulf %52, %53 : vector<1x128xf32>
    %cst_22 = arith.constant dense<0.000000e+00> : vector<128xf32>
    %55 = vector.multi_reduction <add>, %50, %cst_22 [0] : vector<8x128xf32> to vector<128xf32>
    %56 = vector.shape_cast %55 : vector<128xf32> to vector<1x128xf32>
    %cst_23 = arith.constant 1.250000e-01 : f32
    %57 = vector.broadcast %cst_23 : f32 to vector<1x128xf32>
    %58 = arith.mulf %56, %57 : vector<1x128xf32>
    %c1 = arith.constant 1 : index
    %c0_24 = arith.constant 0 : index
    %59 = vector.load %arg4[%c1, %c0_24] : memref<5x128xf32, #tpu.memory_space<vmem>>, vector<1x128xf32>
    %60 = arith.subf %54, %58 : vector<1x128xf32>
    %61 = math.absf %60 : vector<1x128xf32>
    %cst_25 = arith.constant 9.99999997E-7 : f32
    %62 = vector.broadcast %cst_25 : f32 to vector<1x128xf32>
    %63 = arith.addf %61, %62 : vector<1x128xf32>
    %64 = arith.mulf %63, %63 : vector<1x128xf32>
    %cst_26 = arith.constant 1.000000e+06 : f32
    %65 = vector.broadcast %cst_26 : f32 to vector<1x128xf32>
    %66 = arith.minimumf %64, %65 : vector<1x128xf32>
    %cst_27 = arith.constant 0.000000e+00 : f32
    %67 = vector.broadcast %cst_27 : f32 to vector<1x128xf32>
    %68 = arith.select %18, %66, %67 : vector<1x128xi1>, vector<1x128xf32>
    %69 = arith.addf %59, %68 : vector<1x128xf32>
    %c1_28 = arith.constant 1 : index
    %c0_29 = arith.constant 0 : index
    %70 = vector.load %arg4[%c1_28, %c0_29] : memref<5x128xf32, #tpu.memory_space<vmem>>, vector<1x128xf32>
    tpu.vector_store %arg4[%c1_28, %c0_29], %69 {strides = array<i32>} : memref<5x128xf32, #tpu.memory_space<vmem>>, vector<1x128xf32>,
    %71 = arith.mulf %49, %45 : vector<8x128xf32>
    %72 = arith.mulf %50, %48 : vector<8x128xf32>
    %cst_30 = arith.constant dense<0.000000e+00> : vector<128xf32>
    %73 = vector.multi_reduction <add>, %71, %cst_30 [0] : vector<8x128xf32> to vector<128xf32>
    %74 = vector.shape_cast %73 : vector<128xf32> to vector<1x128xf32>
    %cst_31 = arith.constant 1.250000e-01 : f32
    %75 = vector.broadcast %cst_31 : f32 to vector<1x128xf32>
    %76 = arith.mulf %74, %75 : vector<1x128xf32>
    %cst_32 = arith.constant dense<0.000000e+00> : vector<128xf32>
    %77 = vector.multi_reduction <add>, %72, %cst_32 [0] : vector<8x128xf32> to vector<128xf32>
    %78 = vector.shape_cast %77 : vector<128xf32> to vector<1x128xf32>
    %cst_33 = arith.constant 1.250000e-01 : f32
    %79 = vector.broadcast %cst_33 : f32 to vector<1x128xf32>
    %80 = arith.mulf %78, %79 : vector<1x128xf32>
    %c2 = arith.constant 2 : index
    %c0_34 = arith.constant 0 : index
    %81 = vector.load %arg4[%c2, %c0_34] : memref<5x128xf32, #tpu.memory_space<vmem>>, vector<1x128xf32>
    %82 = arith.subf %76, %80 : vector<1x128xf32>
    %83 = math.absf %82 : vector<1x128xf32>
    %cst_35 = arith.constant 9.99999997E-7 : f32
    %84 = vector.broadcast %cst_35 : f32 to vector<1x128xf32>
    %85 = arith.addf %83, %84 : vector<1x128xf32>
    %86 = arith.mulf %85, %85 : vector<1x128xf32>
    %cst_36 = arith.constant 1.000000e+06 : f32
    %87 = vector.broadcast %cst_36 : f32 to vector<1x128xf32>
    %88 = arith.minimumf %86, %87 : vector<1x128xf32>
    %cst_37 = arith.constant 0.000000e+00 : f32
    %89 = vector.broadcast %cst_37 : f32 to vector<1x128xf32>
    %90 = arith.select %18, %88, %89 : vector<1x128xi1>, vector<1x128xf32>
    %91 = arith.addf %81, %90 : vector<1x128xf32>
    %c2_38 = arith.constant 2 : index
    %c0_39 = arith.constant 0 : index
    %92 = vector.load %arg4[%c2_38, %c0_39] : memref<5x128xf32, #tpu.memory_space<vmem>>, vector<1x128xf32>
    tpu.vector_store %arg4[%c2_38, %c0_39], %91 {strides = array<i32>} : memref<5x128xf32, #tpu.memory_space<vmem>>, vector<1x128xf32>,
    %93 = arith.mulf %71, %45 : vector<8x128xf32>
    %94 = arith.mulf %72, %48 : vector<8x128xf32>
    %cst_40 = arith.constant dense<0.000000e+00> : vector<128xf32>
    %95 = vector.multi_reduction <add>, %93, %cst_40 [0] : vector<8x128xf32> to vector<128xf32>
    %96 = vector.shape_cast %95 : vector<128xf32> to vector<1x128xf32>
    %cst_41 = arith.constant 1.250000e-01 : f32
    %97 = vector.broadcast %cst_41 : f32 to vector<1x128xf32>
    %98 = arith.mulf %96, %97 : vector<1x128xf32>
    %cst_42 = arith.constant dense<0.000000e+00> : vector<128xf32>
    %99 = vector.multi_reduction <add>, %94, %cst_42 [0] : vector<8x128xf32> to vector<128xf32>
    %100 = vector.shape_cast %99 : vector<128xf32> to vector<1x128xf32>
    %cst_43 = arith.constant 1.250000e-01 : f32
    %101 = vector.broadcast %cst_43 : f32 to vector<1x128xf32>
    %102 = arith.mulf %100, %101 : vector<1x128xf32>
    %c3 = arith.constant 3 : index
    %c0_44 = arith.constant 0 : index
    %103 = vector.load %arg4[%c3, %c0_44] : memref<5x128xf32, #tpu.memory_space<vmem>>, vector<1x128xf32>
    %104 = arith.subf %98, %102 : vector<1x128xf32>
    %105 = math.absf %104 : vector<1x128xf32>
    %cst_45 = arith.constant 9.99999997E-7 : f32
    %106 = vector.broadcast %cst_45 : f32 to vector<1x128xf32>
    %107 = arith.addf %105, %106 : vector<1x128xf32>
    %108 = arith.mulf %107, %107 : vector<1x128xf32>
    %cst_46 = arith.constant 1.000000e+06 : f32
    %109 = vector.broadcast %cst_46 : f32 to vector<1x128xf32>
    %110 = arith.minimumf %108, %109 : vector<1x128xf32>
    %cst_47 = arith.constant 0.000000e+00 : f32
    %111 = vector.broadcast %cst_47 : f32 to vector<1x128xf32>
    %112 = arith.select %18, %110, %111 : vector<1x128xi1>, vector<1x128xf32>
    %113 = arith.addf %103, %112 : vector<1x128xf32>
    %c3_48 = arith.constant 3 : index
    %c0_49 = arith.constant 0 : index
    %114 = vector.load %arg4[%c3_48, %c0_49] : memref<5x128xf32, #tpu.memory_space<vmem>>, vector<1x128xf32>
    tpu.vector_store %arg4[%c3_48, %c0_49], %113 {strides = array<i32>} : memref<5x128xf32, #tpu.memory_space<vmem>>, vector<1x128xf32>,
    %115 = arith.mulf %93, %45 : vector<8x128xf32>
    %116 = arith.mulf %94, %48 : vector<8x128xf32>
    %cst_50 = arith.constant dense<0.000000e+00> : vector<128xf32>
    %117 = vector.multi_reduction <add>, %115, %cst_50 [0] : vector<8x128xf32> to vector<128xf32>
    %118 = vector.shape_cast %117 : vector<128xf32> to vector<1x128xf32>
    %cst_51 = arith.constant 1.250000e-01 : f32
    %119 = vector.broadcast %cst_51 : f32 to vector<1x128xf32>
    %120 = arith.mulf %118, %119 : vector<1x128xf32>
    %cst_52 = arith.constant dense<0.000000e+00> : vector<128xf32>
    %121 = vector.multi_reduction <add>, %116, %cst_52 [0] : vector<8x128xf32> to vector<128xf32>
    %122 = vector.shape_cast %121 : vector<128xf32> to vector<1x128xf32>
    %cst_53 = arith.constant 1.250000e-01 : f32
    %123 = vector.broadcast %cst_53 : f32 to vector<1x128xf32>
    %124 = arith.mulf %122, %123 : vector<1x128xf32>
    %c4 = arith.constant 4 : index
    %c0_54 = arith.constant 0 : index
    %125 = vector.load %arg4[%c4, %c0_54] : memref<5x128xf32, #tpu.memory_space<vmem>>, vector<1x128xf32>
    %126 = arith.subf %120, %124 : vector<1x128xf32>
    %127 = math.absf %126 : vector<1x128xf32>
    %cst_55 = arith.constant 9.99999997E-7 : f32
    %128 = vector.broadcast %cst_55 : f32 to vector<1x128xf32>
    %129 = arith.addf %127, %128 : vector<1x128xf32>
    %130 = arith.mulf %129, %129 : vector<1x128xf32>
    %cst_56 = arith.constant 1.000000e+06 : f32
    %131 = vector.broadcast %cst_56 : f32 to vector<1x128xf32>
    %132 = arith.minimumf %130, %131 : vector<1x128xf32>
    %cst_57 = arith.constant 0.000000e+00 : f32
    %133 = vector.broadcast %cst_57 : f32 to vector<1x128xf32>
    %134 = arith.select %18, %132, %133 : vector<1x128xi1>, vector<1x128xf32>
    %135 = arith.addf %125, %134 : vector<1x128xf32>
    %c4_58 = arith.constant 4 : index
    %c0_59 = arith.constant 0 : index
    %136 = vector.load %arg4[%c4_58, %c0_59] : memref<5x128xf32, #tpu.memory_space<vmem>>, vector<1x128xf32>
    tpu.vector_store %arg4[%c4_58, %c0_59], %135 {strides = array<i32>} : memref<5x128xf32, #tpu.memory_space<vmem>>, vector<1x128xf32>,
    %c0_i32_60 = arith.constant 0 : i32
    %137 = arith.cmpi eq, %arg0, %c0_i32_60 : i32
    %138 = arith.extui %137 : i1 to i32
    %c0_i32_61 = arith.constant 0 : i32
    %139 = arith.cmpi ne, %138, %c0_i32_61 : i32
    scf.if %139 {
      %c0_62 = arith.constant 0 : index
      %c0_63 = arith.constant 0 : index
      %140 = vector.load %arg4[%c0_62, %c0_63] : memref<5x128xf32, #tpu.memory_space<vmem>>, vector<1x128xf32>
      %141 = vector.shape_cast %140 : vector<1x128xf32> to vector<1x1x128xf32>
      %cst_64 = arith.constant dense<0.000000e+00> : vector<1xf32>
      %142 = vector.multi_reduction <add>, %141, %cst_64 [1, 2] : vector<1x1x128xf32> to vector<1xf32>
      %143 = vector.shape_cast %142 : vector<1xf32> to vector<1x1x1xf32>
      %144 = vector.extract %143[0, 0, 0] : f32 from vector<1x1x1xf32>
      %cst_65 = arith.constant 1.000000e+06 : f32
      %145 = arith.minimumf %144, %cst_65 : f32
      %cst_66 = arith.constant 9.99999997E-7 : f32
      %146 = arith.addf %145, %cst_66 : f32
      %147 = math.sqrt %146 : f32
      %cst_67 = arith.constant 0.000000e+00 : f32
      %148 = arith.addf %cst_67, %147 : f32
      %c1_68 = arith.constant 1 : index
      %c0_69 = arith.constant 0 : index
      %149 = vector.load %arg4[%c1_68, %c0_69] : memref<5x128xf32, #tpu.memory_space<vmem>>, vector<1x128xf32>
      %150 = vector.shape_cast %149 : vector<1x128xf32> to vector<1x1x128xf32>
      %cst_70 = arith.constant dense<0.000000e+00> : vector<1xf32>
      %151 = vector.multi_reduction <add>, %150, %cst_70 [1, 2] : vector<1x1x128xf32> to vector<1xf32>
      %152 = vector.shape_cast %151 : vector<1xf32> to vector<1x1x1xf32>
      %153 = vector.extract %152[0, 0, 0] : f32 from vector<1x1x1xf32>
      %cst_71 = arith.constant 1.000000e+06 : f32
      %154 = arith.minimumf %153, %cst_71 : f32
      %cst_72 = arith.constant 9.99999997E-7 : f32
      %155 = arith.addf %154, %cst_72 : f32
      %156 = math.sqrt %155 : f32
      %157 = arith.addf %148, %156 : f32
      %c2_73 = arith.constant 2 : index
      %c0_74 = arith.constant 0 : index
      %158 = vector.load %arg4[%c2_73, %c0_74] : memref<5x128xf32, #tpu.memory_space<vmem>>, vector<1x128xf32>
      %159 = vector.shape_cast %158 : vector<1x128xf32> to vector<1x1x128xf32>
      %cst_75 = arith.constant dense<0.000000e+00> : vector<1xf32>
      %160 = vector.multi_reduction <add>, %159, %cst_75 [1, 2] : vector<1x1x128xf32> to vector<1xf32>
      %161 = vector.shape_cast %160 : vector<1xf32> to vector<1x1x1xf32>
      %162 = vector.extract %161[0, 0, 0] : f32 from vector<1x1x1xf32>
      %cst_76 = arith.constant 1.000000e+06 : f32
      %163 = arith.minimumf %162, %cst_76 : f32
      %cst_77 = arith.constant 9.99999997E-7 : f32
      %164 = arith.addf %163, %cst_77 : f32
      %165 = math.sqrt %164 : f32
      %166 = arith.addf %157, %165 : f32
      %c3_78 = arith.constant 3 : index
      %c0_79 = arith.constant 0 : index
      %167 = vector.load %arg4[%c3_78, %c0_79] : memref<5x128xf32, #tpu.memory_space<vmem>>, vector<1x128xf32>
      %168 = vector.shape_cast %167 : vector<1x128xf32> to vector<1x1x128xf32>
      %cst_80 = arith.constant dense<0.000000e+00> : vector<1xf32>
      %169 = vector.multi_reduction <add>, %168, %cst_80 [1, 2] : vector<1x1x128xf32> to vector<1xf32>
      %170 = vector.shape_cast %169 : vector<1xf32> to vector<1x1x1xf32>
      %171 = vector.extract %170[0, 0, 0] : f32 from vector<1x1x1xf32>
      %cst_81 = arith.constant 1.000000e+06 : f32
      %172 = arith.minimumf %171, %cst_81 : f32
      %cst_82 = arith.constant 9.99999997E-7 : f32
      %173 = arith.addf %172, %cst_82 : f32
      %174 = math.sqrt %173 : f32
      %175 = arith.addf %166, %174 : f32
      %c4_83 = arith.constant 4 : index
      %c0_84 = arith.constant 0 : index
      %176 = vector.load %arg4[%c4_83, %c0_84] : memref<5x128xf32, #tpu.memory_space<vmem>>, vector<1x128xf32>
      %177 = vector.shape_cast %176 : vector<1x128xf32> to vector<1x1x128xf32>
      %cst_85 = arith.constant dense<0.000000e+00> : vector<1xf32>
      %178 = vector.multi_reduction <add>, %177, %cst_85 [1, 2] : vector<1x1x128xf32> to vector<1xf32>
      %179 = vector.shape_cast %178 : vector<1xf32> to vector<1x1x1xf32>
      %180 = vector.extract %179[0, 0, 0] : f32 from vector<1x1x1xf32>
      %cst_86 = arith.constant 1.000000e+06 : f32
      %181 = arith.minimumf %180, %cst_86 : f32
      %cst_87 = arith.constant 9.99999997E-7 : f32
      %182 = arith.addf %181, %cst_87 : f32
      %183 = math.sqrt %182 : f32
      %184 = arith.addf %175, %183 : f32
      %cst_88 = arith.constant 1.250000e-01 : f32
      %185 = arith.mulf %184, %cst_88 : f32
      %c0_89 = arith.constant 0 : index
      %c0_90 = arith.constant 0 : index
      %186 = memref.load %arg3[%c0_89, %c0_90] : memref<1x1xf32, #tpu.memory_space<smem>>
      memref.store %185, %arg3[%c0_89, %c0_90] : memref<1x1xf32, #tpu.memory_space<smem>>
    } else {
    }
    return
  }
  func.func @transform_0(%arg0: i32) -> (i32, i32) {
    %c0_i32 = arith.constant 0 : i32
    %c0_i32_0 = arith.constant 0 : i32
    return %c0_i32, %arg0 : i32, i32
  }
  func.func @transform_1(%arg0: i32) -> (i32, i32) {
    %c0_i32 = arith.constant 0 : i32
    %c0_i32_0 = arith.constant 0 : i32
    return %c0_i32, %arg0 : i32, i32
  }
  func.func @transform_2(%arg0: i32) -> (i32, i32) {
    %c0_i32 = arith.constant 0 : i32
    %c0_i32_0 = arith.constant 0 : i32
    %c0_i32_1 = arith.constant 0 : i32
    return %c0_i32, %c0_i32_0 : i32, i32
  }
}

</mosaic_0001>

<bundles_post_ra>
// kernel: _lambda_.1
= control target key start
LH: loop header
LB: loop body
LE: loop exit
PB: predicated region body
PF: predicated region fallthrough
CT: control target
= control target key end

     0   :  { %s419_s0 = inlined_call_operand.vmem [shape: f32[8,128], index: 0, kind: input, shape index: {}]   ;;  %s420_s1 = inlined_call_operand.vmem [shape: f32[8,128], index: 1, kind: input, shape index: {}]   ;;  %s421_s2 = inlined_call_operand.hbm [shape: f32[1,1], index: 2, kind: output, shape index: {}]  }
   0x1   :  { %v17_v0 = vld [vmem:[%s419_s0] sm:$0xff] }
   0x2   :  { %v20_v1 = vld [vmem:[%s420_s1] sm:$0xff] }
   0x3   :  { %7 = vsyncpa [#allocation4], 0  ;;  %v340_v2 = vmov 0.0   ;;  %v293_v3 = vclamps-f32 %v17_v0, 1000000.0  ;;  %v23_v19 = vlaneseq  ;;  %vm162_vm1 = vcmask 1040384  }
   0x4   :  { %16 = vst [vmem:[#allocation2] sm:$0x1f] %v340_v2  ;;  %v294_v4 = vclamps-f32 %v20_v1, 1000000.0  ;;  %s341_s1 = smov 1000000.0  }
   0x5   :  { %v29_v5 = vrot.slane %v293_v3, 4  ;;  %v364_v26 = vand.u32 127, %v23_v19  ;;  %s328_s11 = scalar_lea.hbm %s421_s2, 16 }
   0x6   :  { %v36_v6 = vrot.slane %v294_v4, 4  ;;  %p329_p0 = scmp.ne.s32.totalorder %s421_s2, %s328_s11  ;;  %p332_p1 = scmp.lt.u32.totalorder %s328_s11, %s421_s2 }
   0x7   :  { %v30_v7 = vadd.f32 %v293_v3, %v29_v5  ;;  %vm28_vm0 = vcmp.lt.s32.totalorder %v364_v26, 32 }
   0x8   :  { %v37_v8 = vadd.f32 %v294_v4, %v36_v6  ;;  %p334_p2 = pnand %p332_p1, %p329_p0 }
   0x9   :  { %v31_v9 = vrot.slane %v30_v7, 2 }
   0xa   :  { %v38_v10 = vrot.slane %v37_v8, 2 }
   0xb   :  { %v32_v11 = vadd.f32 %v31_v9, %v30_v7  ;;  %v43_v33 = vld [vmem:[#allocation2] sm:$0x1] }
   0xc   :  { %v39_v12 = vadd.f32 %v38_v10, %v37_v8 }
   0xd   :  { %v33_v13 = vrot.slane %v32_v11, 1 }
   0xe   :  { %v40_v14 = vrot.slane %v39_v12, 1 }
   0xf   :  { %v34_v15 = vadd.f32 %v33_v13, %v32_v11 }
  0x10   :  { %v41_v16 = vadd.f32 %v40_v14, %v39_v12  ;;  %v74_v12 = vld [vmem:[#allocation2 + $0x1] sm:$0x1] }
  0x11   :  { %v35_v17 = vmul.f32 0.125, %v34_v15 }
  0x12   :  { %v42_v18 = vmul.f32 0.125, %v41_v16 }
  0x13   :  { %v52_v21 = vsub.f32 %v293_v3, %v35_v17 }
  0x14   :  { %v44_v20 = vsub.f32 %v35_v17, %v42_v18  ;;  %v53_v22 = vsub.f32 %v294_v4, %v42_v18  ;;  %v99_v17 = vld [vmem:[#allocation2 + $0x2] sm:$0x1] }
  0x15   :  { %v54_v24 = vand.u32 2147483647, %v52_v21 }
  0x16   :  { %v45_v23 = vand.u32 2147483647, %v44_v20  ;;  %v56_v25 = vand.u32 2147483647, %v53_v22 }
  0x17   :  { %v366_v28 = vadd.f32 1e-06, %v54_v24 }
  0x18   :  { %v46_v27 = vadd.f32 1e-06, %v45_v23  ;;  %v368_v29 = vadd.f32 1e-06, %v56_v25 }
  0x19   :  { %v58_v31 = vmul.f32 %v366_v28, %v366_v28 }
  0x1a   :  { %v47_v30 = vmul.f32 %v46_v27, %v46_v27  ;;  %v59_v32 = vmul.f32 %v368_v29, %v368_v29 }
  0x1b   :  { %v60_v35 = vrot.slane %v58_v31, 4  ;;  %v83_v37 = vmul.f32 %v58_v31, %v366_v28 }
  0x1c   :  { %v48_v34 = vmin.f32 %v47_v30, 1000000.0  ;;  %v67_v36 = vrot.slane %v59_v32, 4  ;;  %v84_v38 = vmul.f32 %v59_v32, %v368_v29 }
  0x1d   :  { %v61_v40 = vadd.f32 %v60_v35, %v58_v31  ;;  %v85_v42 = vrot.slane %v83_v37, 4  ;;  %v108_v25 = vmul.f32 %v83_v37, %v366_v28 }
  0x1e   :  { %v49_v39 = vsel %vm28_vm0, %v48_v34, 0.0  ;;  %v68_v41 = vadd.f32 %v67_v36, %v59_v32  ;;  %v92_v44 = vrot.slane %v84_v38, 4  ;;  %v109_v27 = vmul.f32 %v84_v38, %v368_v29 }
  0x1f   :  { %v50_v43 = vadd.f32 %v49_v39, %v43_v33  ;;  %v62_v45 = vrot.slane %v61_v40, 2  ;;  %v86_v47 = vadd.f32 %v85_v42, %v83_v37  ;;  %v110_v30 = vrot.slane %v108_v25, 4 }
  0x20   :  { %v69_v46 = vrot.slane %v68_v41, 2  ;;  %v93_v48 = vadd.f32 %v92_v44, %v84_v38  ;;  %v117_v31 = vrot.slane %v109_v27, 4 }
  0x21   :  { %51 = vst [vmem:[#allocation2] sm:$0x1] %v50_v43  ;;  %v63_v49 = vadd.f32 %v62_v45, %v61_v40  ;;  %v87_v51 = vrot.slane %v86_v47, 2  ;;  %v111_v32 = vadd.f32 %v110_v30, %v108_v25 }
  0x22   :  { %v70_v50 = vadd.f32 %v69_v46, %v68_v41  ;;  %v94_v52 = vrot.slane %v93_v48, 2  ;;  %v118_v33 = vadd.f32 %v117_v31, %v109_v27 }
  0x23   :  { %v64_v53 = vrot.slane %v63_v49, 1  ;;  %v88_v55 = vadd.f32 %v87_v51, %v86_v47  ;;  %v112_v34 = vrot.slane %v111_v32, 2 }
  0x24   :  { %v71_v54 = vrot.slane %v70_v50, 1  ;;  %v95_v56 = vadd.f32 %v94_v52, %v93_v48  ;;  %v119_v35 = vrot.slane %v118_v33, 2 }
  0x25   :  { %v65_v57 = vadd.f32 %v64_v53, %v63_v49  ;;  %v89_v59 = vrot.slane %v88_v55, 1  ;;  %v113_v36 = vadd.f32 %v112_v34, %v111_v32  ;;  %v124_v49 = vld [vmem:[#allocation2 + $0x3] sm:$0x1] }
  0x26   :  { %v72_v58 = vadd.f32 %v71_v54, %v70_v50  ;;  %v96_v60 = vrot.slane %v95_v56, 1  ;;  %v120_v39 = vadd.f32 %v119_v35, %v118_v33  ;;  %v133_v54 = vmul.f32 %v108_v25, %v366_v28 }
  0x27   :  { %v66_v62 = vmul.f32 0.125, %v65_v57  ;;  %v90_v0 = vadd.f32 %v89_v59, %v88_v55  ;;  %v114_v40 = vrot.slane %v113_v36, 1  ;;  %v134_v55 = vmul.f32 %v109_v27, %v368_v29 }
  0x28   :  { %v161_v61 = vld [vmem:[#allocation2] sm:$0x1]  ;;  %v73_v63 = vmul.f32 0.125, %v72_v58  ;;  %v97_v2 = vadd.f32 %v96_v60, %v95_v56  ;;  %v121_v41 = vrot.slane %v120_v39, 1  ;;  %v135_v56 = vrot.slane %v133_v54, 4 }
  0x29   :  { %v163_v1 = vsel %vm162_vm1, %v161_v61, 0.0  ;;  %v91_v4 = vmul.f32 0.125, %v90_v0  ;;  %v115_v42 = vadd.f32 %v114_v40, %v113_v36  ;;  %v142_v57 = vrot.slane %v134_v55, 4 }
  0x2a   :  { %164 = vadd.xlane.f32.xlu0 %v163_v1  ;;  %v75_v3 = vsub.f32 %v66_v62, %v73_v63  ;;  %v98_v5 = vmul.f32 0.125, %v97_v2  ;;  %v122_v43 = vadd.f32 %v121_v41, %v120_v39  ;;  %v136_v58 = vadd.f32 %v135_v56, %v133_v54 }
  0x2b   :  { %v116_v44 = vmul.f32 0.125, %v115_v42  ;;  %v143_v59 = vadd.f32 %v142_v57, %v134_v55 }
  0x2c   :  { %v76_v6 = vand.u32 2147483647, %v75_v3  ;;  %v100_v7 = vsub.f32 %v91_v4, %v98_v5  ;;  %v123_v45 = vmul.f32 0.125, %v122_v43  ;;  %v137_v60 = vrot.slane %v136_v58, 2 }
  0x2d   :  { %v144_v61 = vrot.slane %v143_v59, 2 }
  0x2e   :  { %v77_v8 = vadd.f32 1e-06, %v76_v6  ;;  %v101_v9 = vand.u32 2147483647, %v100_v7  ;;  %v125_v46 = vsub.f32 %v116_v44, %v123_v45  ;;  %v138_v62 = vadd.f32 %v137_v60, %v136_v58 }
  0x2f   :  { %v145_v63 = vadd.f32 %v144_v61, %v143_v59 }
  0x30   :  { %v78_v10 = vmul.f32 %v77_v8, %v77_v8  ;;  %v102_v11 = vadd.f32 1e-06, %v101_v9  ;;  %v126_v47 = vand.u32 2147483647, %v125_v46  ;;  %v139_v0 = vrot.slane %v138_v62, 1 }
  0x31   :  { %v146_v1 = vrot.slane %v145_v63, 1  ;;  %v149_v9 = vld [vmem:[#allocation2 + $0x4] sm:$0x1] }
  0x32   :  { %v79_v13 = vmin.f32 %v78_v10, 1000000.0  ;;  %v103_v14 = vmul.f32 %v102_v11, %v102_v11  ;;  %v127_v48 = vadd.f32 1e-06, %v126_v47  ;;  %v140_v2 = vadd.f32 %v139_v0, %v138_v62 }
  0x33   :  { %v147_v3 = vadd.f32 %v146_v1, %v145_v63 }
  0x34   :  { %v80_v15 = vsel %vm28_vm0, %v79_v13, 0.0  ;;  %v104_v18 = vmin.f32 %v103_v14, 1000000.0  ;;  %v128_v37 = vmul.f32 %v127_v48, %v127_v48  ;;  %v141_v4 = vmul.f32 0.125, %v140_v2 }
  0x35   :  { %v81_v16 = vadd.f32 %v80_v15, %v74_v12  ;;  %v148_v5 = vmul.f32 0.125, %v147_v3 }
  0x36   :  { %v105_v19 = vsel %vm28_vm0, %v104_v18, 0.0  ;;  %v129_v38 = vmin.f32 %v128_v37, 1000000.0 }
  0x37   :  { %82 = vst [vmem:[#allocation2 + $0x1] sm:$0x1] %v81_v16  ;;  %v106_v20 = vadd.f32 %v105_v19, %v99_v17  ;;  %v150_v6 = vsub.f32 %v141_v4, %v148_v5 }
  0x38   :  { %v130_v50 = vsel %vm28_vm0, %v129_v38, 0.0 }
  0x39   :  { %107 = vst [vmem:[#allocation2 + $0x2] sm:$0x1] %v106_v20  ;;  %v131_v51 = vadd.f32 %v130_v50, %v124_v49  ;;  %v151_v7 = vand.u32 2147483647, %v150_v6 }
  0x3b   :  { %132 = vst [vmem:[#allocation2 + $0x3] sm:$0x1] %v131_v51  ;;  %v152_v8 = vadd.f32 1e-06, %v151_v7 }
  0x3d   :  { %v153_v28 = vmul.f32 %v152_v8, %v152_v8 }
  0x3e   :  { %v185_v21 = vld [vmem:[#allocation2 + $0x1] sm:$0x1] }
  0x3f   :  { %v186_v22 = vsel %vm162_vm1, %v185_v21, 0.0  ;;  %v154_v29 = vmin.f32 %v153_v28, 1000000.0 }
  0x40   :  { %187 = vadd.xlane.f32.xlu0 %v186_v22  ;;  %v208_v23 = vld [vmem:[#allocation2 + $0x2] sm:$0x1] }
  0x41   :  { %v209_v24 = vsel %vm162_vm1, %v208_v23, 0.0  ;;  %v155_v10 = vsel %vm28_vm0, %v154_v29, 0.0 }
  0x42   :  { %210 = vadd.xlane.f32.xlu1 %v209_v24  ;;  %v231_v52 = vld [vmem:[#allocation2 + $0x3] sm:$0x1]  ;;  %v156_v11 = vadd.f32 %v155_v10, %v149_v9 }
  0x43   :  { %v232_v53 = vsel %vm162_vm1, %v231_v52, 0.0 }
  0x44   :  { %157 = vst [vmem:[#allocation2 + $0x4] sm:$0x1] %v156_v11 }
  0x46   :  { %233 = vadd.xlane.f32.xlu1 %v232_v53 }
  0x4b   :  { %v254_v12 = vld [vmem:[#allocation2 + $0x4] sm:$0x1] }
  0x4c   :  { %v255_v13 = vsel %vm162_vm1, %v254_v12, 0.0 }
  0x4d   :  { %256 = vadd.xlane.f32.xlu0 %v255_v13 }
  0xb7   :  { %v165_v14 = vpop.xlane.xlu0 %164 }
  0xb8   :  { %v166_v15 = vrot.slane %v165_v14, 4 }
  0xba   :  { %v167_v16 = vadd.f32 %v166_v15, %v165_v14 }
  0xbc   :  { %v168_v17 = vrot.slane %v167_v16, 2 }
  0xbe   :  { %v169_v18 = vadd.f32 %v168_v17, %v167_v16 }
  0xc0   :  { %v170_v19 = vrot.slane %v169_v18, 1 }
  0xc2   :  { %v171_v20 = vadd.f32 %v170_v19, %v169_v18 }
  0xc4   :  { %295 = vpush %v171_v20 }
  0xcd   :  { %v188_v21 = vpop.xlane.xlu0 %187 }
  0xce   :  { %v189_v22 = vrot.slane %v188_v21, 4 }
  0xcf   :  { %v211_v36 = vpop.xlane.xlu1 %210 }
  0xd0   :  { %v190_v26 = vadd.f32 %v189_v22, %v188_v21  ;;  %v212_v39 = vrot.slane %v211_v36, 4 }
  0xd2   :  { %v191_v24 = vrot.slane %v190_v26, 2  ;;  %v213_v40 = vadd.f32 %v212_v39, %v211_v36 }
  0xd3   :  { %v234_v38 = vpop.xlane.xlu1 %233 }
  0xd4   :  { %v192_v25 = vadd.f32 %v191_v24, %v190_v26  ;;  %v214_v42 = vrot.slane %v213_v40, 2  ;;  %v235_v50 = vrot.slane %v234_v38, 4 }
  0xd6   :  { %v193_v30 = vrot.slane %v192_v25, 1  ;;  %v215_v43 = vadd.f32 %v214_v42, %v213_v40  ;;  %v236_v51 = vadd.f32 %v235_v50, %v234_v38 }
  0xd8   :  { %v194_v35 = vadd.f32 %v193_v30, %v192_v25  ;;  %v216_v45 = vrot.slane %v215_v43, 1  ;;  %v237_v53 = vrot.slane %v236_v51, 2 }
  0xda   :  { %v217_v49 = vadd.f32 %v216_v45, %v215_v43  ;;  %v238_v54 = vadd.f32 %v237_v53, %v236_v51  ;;  %v257_v62 = vpop.xlane.xlu0 %256 }
  0xdb   :  { %v258_v63 = vrot.slane %v257_v62, 4 }
  0xdc   :  { %v239_v56 = vrot.slane %v238_v54, 1 }
  0xdd   :  { %v259_v0 = vadd.f32 %v258_v63, %v257_v62 }
  0xde   :  { %v240_v61 = vadd.f32 %v239_v56, %v238_v54 }
  0xdf   :  { %v260_v2 = vrot.slane %v259_v0, 2 }
  0xe1   :  { %v261_v3 = vadd.f32 %v260_v2, %v259_v0 }
  0xe3   :  { %v262_v5 = vrot.slane %v261_v3, 1 }
  0xe5   :  { %v263_v9 = vadd.f32 %v262_v5, %v261_v3 }
  0xf5   :  { %s296_s0 = spop %295 }
  0xf6   :  { %s173_s13 = smin.f32 %s341_s1, %s296_s0 }
  0xf7   :  { %s174_s14 = sadd.f32 1e-06, %s173_s13 }
  0xf9   :  { %v175_v23 = vstv %s174_s14 }
  0xfa   :  { %318 = vrsqrt.f32 %v175_v23  ;;  %vm178_vm2 = vcmp.eq.f32.partialorder %v175_v23, inf  ;;  %v181_v32 = vand.u32 2147483648, %v175_v23  ;;  %vm180_vm3 = vcmp.eq.f32.partialorder %v175_v23, 0.0 }
 0x104   :  { %v319_v27 = vpop.eup %318 }
 0x105   :  { %v177_v31 = vmul.f32 %v319_v27, %v175_v23 }
 0x107   :  { %v179_v33 = vsel %vm178_vm2, %v175_v23, %v177_v31 }
 0x108   :  { %v182_v34 = vsel %vm180_vm3, %v181_v32, %v179_v33 }
 0x109   :  { %297 = vpush %v182_v34 }
 0x10a   :  { %299 = vpush %v194_v35 }
 0x13a   :  { %s397_s15 = spop %297 }
 0x13b   :  { %s300_s16 = spop %299 }
 0x13c   :  { %s196_s17 = smin.f32 %s341_s1, %s300_s16 }
 0x13d   :  { %s197_s18 = sadd.f32 1e-06, %s196_s17 }
 0x13f   :  { %v198_v41 = vstv %s197_s18 }
 0x140   :  { %320 = vrsqrt.f32 %v198_v41  ;;  %vm201_vm4 = vcmp.eq.f32.partialorder %v198_v41, inf  ;;  %v204_v47 = vand.u32 2147483648, %v198_v41  ;;  %vm203_vm5 = vcmp.eq.f32.partialorder %v198_v41, 0.0 }
 0x14a   :  { %v321_v44 = vpop.eup %320 }
 0x14b   :  { %v200_v46 = vmul.f32 %v321_v44, %v198_v41 }
 0x14d   :  { %v202_v48 = vsel %vm201_vm4, %v198_v41, %v200_v46 }
 0x14e   :  { %v205_v37 = vsel %vm203_vm5, %v204_v47, %v202_v48 }
 0x14f   :  { %301 = vpush %v205_v37 }
 0x150   :  { %303 = vpush %v217_v49 }
 0x180   :  { %s302_s19 = spop %301 }
 0x181   :  { %s304_s20 = spop %303  ;;  %s207_s23 = sadd.f32 %s302_s19, %s397_s15 }
 0x182   :  { %s219_s21 = smin.f32 %s341_s1, %s304_s20 }
 0x183   :  { %s220_s22 = sadd.f32 1e-06, %s219_s21 }
 0x185   :  { %v221_v52 = vstv %s220_s22 }
 0x186   :  { %322 = vrsqrt.f32 %v221_v52  ;;  %vm224_vm6 = vcmp.eq.f32.partialorder %v221_v52, inf  ;;  %v227_v58 = vand.u32 2147483648, %v221_v52  ;;  %vm226_vm7 = vcmp.eq.f32.partialorder %v221_v52, 0.0 }
 0x190   :  { %v323_v55 = vpop.eup %322 }
 0x191   :  { %v223_v57 = vmul.f32 %v323_v55, %v221_v52 }
 0x193   :  { %v225_v59 = vsel %vm224_vm6, %v221_v52, %v223_v57 }
 0x194   :  { %v228_v60 = vsel %vm226_vm7, %v227_v58, %v225_v59 }
 0x195   :  { %305 = vpush %v228_v60 }
 0x196   :  { %307 = vpush %v240_v61 }
 0x1c6   :  { %s306_s24 = spop %305 }
 0x1c7   :  { %s402_s25 = sadd.f32 %s306_s24, %s207_s23  ;;  %s308_s26 = spop %307 }
 0x1c8   :  { %s242_s27 = smin.f32 %s341_s1, %s308_s26 }
 0x1c9   :  { %s243_s28 = sadd.f32 1e-06, %s242_s27 }
 0x1cb   :  { %v244_v1 = vstv %s243_s28 }
 0x1cc   :  { %324 = vrsqrt.f32 %v244_v1  ;;  %vm247_vm8 = vcmp.eq.f32.partialorder %v244_v1, inf  ;;  %v250_v7 = vand.u32 2147483648, %v244_v1  ;;  %vm249_vm9 = vcmp.eq.f32.partialorder %v244_v1, 0.0 }
 0x1d6   :  { %v325_v4 = vpop.eup %324 }
 0x1d7   :  { %v246_v6 = vmul.f32 %v325_v4, %v244_v1 }
 0x1d9   :  { %v248_v8 = vsel %vm247_vm8, %v244_v1, %v246_v6 }
 0x1da   :  { %v251_v28 = vsel %vm249_vm9, %v250_v7, %v248_v8 }
 0x1db   :  { %309 = vpush %v251_v28 }
 0x1dc   :  { %311 = vpush %v263_v9 }
 0x20c   :  { %s310_s29 = spop %309 }
 0x20d   :  { %s253_s30 = sadd.f32 %s310_s29, %s402_s25  ;;  %s312_s3 = spop %311 }
 0x20e   :  { %s265_s4 = smin.f32 %s341_s1, %s312_s3 }
 0x20f   :  { %s266_s5 = sadd.f32 1e-06, %s265_s4 }
 0x211   :  { %v267_v29 = vstv %s266_s5 }
 0x212   :  { %326 = vrsqrt.f32 %v267_v29  ;;  %vm270_vm10 = vcmp.eq.f32.partialorder %v267_v29, inf  ;;  %v273_v12 = vand.u32 2147483648, %v267_v29  ;;  %vm272_vm11 = vcmp.eq.f32.partialorder %v267_v29, 0.0 }
 0x21c   :  { %v327_v10 = vpop.eup %326 }
 0x21d   :  { %v269_v11 = vmul.f32 %v327_v10, %v267_v29 }
 0x21f   :  { %v271_v13 = vsel %vm270_vm10, %v267_v29, %v269_v11 }
 0x220   :  { %v274_v14 = vsel %vm272_vm11, %v273_v12, %v271_v13 }
 0x221   :  { %313 = vpush %v274_v14 }
 0x252   :  { %s314_s6 = spop %313 }
 0x253   :  { %s276_s7 = sadd.f32 %s314_s6, %s253_s30 }
 0x255   :  { %s277_s8 = smul.f32 0.125, %s276_s7 }
 0x257   :  { %279 = sst [smem:[#allocation3]] %s277_s8 }
 0x258   :  { %337 = shalt.err (!%p334_p2)
}
 0x259   :  { %s342_s14 = smov [#allocation3]  }
 0x25a   :  { %287 = dma.smem_to_hbm %s342_s14, 16, %s421_s2, [#allocation4]  }
 0x25b   :  { %338 = dma.done.wait [#allocation4], 16  }
 0x25c   :  { %339 = vsyncadd [#allocation4], 4294967280 }
 0x25d   :  { %291 = sfence }
 0x25e   :  { %292 = vsyncpa [#allocation4], 1 }

</bundles_post_ra>
